<compile_context>
chip_gen: v5e
topology: v5e:2x2
jax: 0.10.0
libtpu: 0.0.40
codegen_flags: <defaults>
</compile_context>

<pallas_src>
import math
import functools

import jax
import jax.numpy as jnp
from jax.experimental import pallas as pl
from jax.experimental.pallas import tpu as pltpu


def _round_up(n, m):
    return ((n + m - 1) // m) * m


def mapping_kernel(x_ref, wt_ref, b_ref, o_ref, *, num_layers, leaky_slope, true_d):
    # ---- PixelNorm over the (true) feature axis, in f32 ----
    # Padded feature lanes are zero, so the sum over padded lanes equals the sum
    # over true features; divide by the TRUE feature count.  rsqrt runs on the
    # EUP slot (essentially free under the MXU).
    x = x_ref[...].astype(jnp.float32)                       # (TB, Dp)
    ms = jnp.sum(x * x, axis=1, keepdims=True) * (1.0 / true_d)
    x = x * jax.lax.rsqrt(ms + 1e-8)

    # ---- shared equalized linear ----
    # wt is pre-transposed (Dp, Dp), pre-scaled by 1/sqrt(z_dim), and already in
    # the MXU operand dtype (bf16 by default): loaded once, no per-step scaling,
    # casting or transposing.  Padded rows/cols are zero so chaining stays exact.
    wt = wt_ref[...]
    mxu_dtype = wt.dtype
    # Bias broadcast hoisted out of the unrolled loop (JAX doesn't CSE it).
    bb = jnp.broadcast_to(b_ref[...].astype(jnp.float32), (x.shape[0], wt.shape[1]))

    # ---- num_layers x (activation -> linear), weights shared ----
    # Carried activation stays f32; only the dot operands are cast to the MXU
    # dtype, with f32 accumulation (preferred_element_type).
    def body(_, acc):
        if leaky_slope == 0.0:
            a = jnp.maximum(acc, 0.0)                        # ReLU (static specialization)
        else:
            a = jnp.maximum(acc, 0.0) + leaky_slope * jnp.minimum(acc, 0.0)
        return jnp.dot(a.astype(mxu_dtype), wt,
                       preferred_element_type=jnp.float32) + bb

    x = jax.lax.fori_loop(0, num_layers, body, x, unroll=True)
    o_ref[...] = x.astype(o_ref.dtype)


def mapping_network_unlabelled(x, weight, bias, *, num_layers, leaky_slope=0.0,
                               batch_tile=512, bf16_matmul=True):
    """x: (B, z_dim); weight: (w_dim, z_dim) PyTorch layout; bias: (w_dim,)."""
    B, D_in = x.shape
    D_out = weight.shape[0]
    assert weight.shape == (D_out, D_in)
    # Repeated application of the shared linear requires z_dim == w_dim.
    assert D_in == D_out, "shared-layer mapping net needs z_dim == w_dim"
    scale = 1.0 / math.sqrt(D_in)                            # equalized learning-rate scale

    # ---- feature padding only when needed (lane-dense, unmasked vst) ----
    Dp = _round_up(D_in, 128)

    # ---- batch tile: multiple of 8; keep >=2 grid steps when the batch can be
    # split so the "parallel" axis actually shards across v7x's two TCs. ----
    TB = min(_round_up(batch_tile, 8), _round_up(B, 8))
    two_step_cap = _round_up(-(-B // 2), 8)                  # ceil(B/2) rounded to 8
    if two_step_cap < _round_up(B, 8):
        TB = min(TB, two_step_cap)
    grid_b = pl.cdiv(B, TB)        # last block may overhang; OOB rows never written

    # ---- fold scale (and the MXU-operand cast) into the resident weight ONCE ----
    mxu_dtype = jnp.bfloat16 if bf16_matmul else jnp.float32
    wt = (weight.T.astype(jnp.float32) * scale).astype(mxu_dtype)    # (D, D)
    bp = bias.astype(jnp.float32)
    xp = x
    if Dp != D_in:
        wt = jnp.pad(wt, ((0, Dp - D_in), (0, Dp - D_out)))
        bp = jnp.pad(bp, (0, Dp - D_out))
        xp = jnp.pad(x, ((0, 0), (0, Dp - D_in)))
    bp = bp.reshape(1, Dp)

    kernel = functools.partial(
        mapping_kernel, num_layers=num_layers, leaky_slope=leaky_slope, true_d=D_in)

    x_bytes = jnp.dtype(x.dtype).itemsize
    w_bytes = jnp.dtype(mxu_dtype).itemsize
    # Scoped-VMEM budget: double-buffered x/out tiles + single-buffered resident
    # weight/bias + f32 in-kernel temps, with headroom.  (v5e default scoped
    # VMEM is only 16 MiB; v7x has 64 MiB physical.)
    vmem_need = (2 * TB * Dp * x_bytes            # x tiles (double-buffered)
                 + 2 * TB * Dp * x_bytes          # out tiles (double-buffered)
                 + Dp * Dp * w_bytes              # resident weight (single buffer)
                 + Dp * 4                         # resident bias
                 + 6 * TB * Dp * 4)               # f32 activation temps / spill headroom
    vmem_limit = int(min(64 * 1024 * 1024, max(16 * 1024 * 1024, 2 * vmem_need)))

    cost = pl.CostEstimate(
        flops=int(2 * num_layers * B * Dp * Dp),
        transcendentals=int(B),                              # one rsqrt per row
        bytes_accessed=int(2 * B * Dp * x_bytes + Dp * Dp * w_bytes + Dp * 4),
    )

    # Weight / bias index_maps are constant -> a second pipeline buffer is dead
    # VMEM; single-buffer them so bigger batch tiles fit (critical on v7x).
    resident = dict(pipeline_mode=pl.Buffered(1))

    out_p = pl.pallas_call(
        kernel,
        out_shape=jax.ShapeDtypeStruct((B, Dp), x.dtype),
        grid=(grid_b,),
        in_specs=[
            pl.BlockSpec((TB, Dp), lambda i: (i, 0)),                # batch-tiled x
            pl.BlockSpec((Dp, Dp), lambda i: (0, 0), **resident),    # resident weight.T (pre-scaled)
            pl.BlockSpec((1, Dp), lambda i: (0, 0), **resident),     # resident bias
        ],
        out_specs=pl.BlockSpec((TB, Dp), lambda i: (i, 0)),
        compiler_params=pltpu.CompilerParams(
            dimension_semantics=("parallel",),     # shard batch tiles on v7x dual-TC
            vmem_limit_bytes=vmem_limit,
        ),
        cost_estimate=cost,
    )(xp, wt, bp)

    return out_p[:, :D_out] if Dp != D_out else out_p


def mapping_network_ref(x, weight, bias, *, num_layers, leaky_slope=0.0):
    """Pure-JAX reference mirroring the PyTorch forward exactly."""
    x = x / jnp.sqrt(jnp.mean(x**2, axis=1, keepdims=True) + 1e-8)
    scale = 1.0 / math.sqrt(x.shape[1])
    for _ in range(num_layers):
        x = jnp.maximum(x, 0.0) + leaky_slope * jnp.minimum(x, 0.0)
        x = x @ (weight * scale).T + bias
    return x


if __name__ == "__main__":
    # Repeated application of the shared linear requires z_dim == w_dim.
    B, Z_DIM, W_DIM, NUM_LAYERS = 8, 32, 32, 4

    key = jax.random.PRNGKey(0)
    kx, kw = jax.random.split(key)
    x = jax.random.normal(kx, (B, Z_DIM), dtype=jnp.float32)
    # EqualizedLinear init: weight ~ N(0,1), bias = 0 (bias=0. default)
    weight = jax.random.normal(kw, (W_DIM, Z_DIM), dtype=jnp.float32)
    bias = jnp.zeros((W_DIM,), dtype=jnp.float32)

    ref = mapping_network_ref(x, weight, bias, num_layers=NUM_LAYERS)

    # f32 MXU path: tight tolerance vs. the f32 reference.
    out_f32 = jax.block_until_ready(
        mapping_network_unlabelled(x, weight, bias, num_layers=NUM_LAYERS,
                                   bf16_matmul=False))
    assert out_f32.shape == (B, W_DIM)
    assert jnp.allclose(out_f32, ref, atol=1e-4, rtol=1e-4), "f32 path mismatch"

    # bf16 MXU path (default fast path): f32 accumulation and f32 carried
    # activation; looser tolerance since bf16 operand rounding compounds over
    # the chained shared layers.
    out = jax.block_until_ready(
        mapping_network_unlabelled(x, weight, bias, num_layers=NUM_LAYERS))
    assert out.shape == (B, W_DIM)
    assert jnp.allclose(out, ref, atol=5e-2, rtol=5e-2), "bf16 path mismatch"

    print("KERNEL_OK")
</pallas_src>

<mosaic_0001>
module attributes {stable_mosaic.version = 11 : i64} {
  func.func @mapping_kernel(%arg0: i32, %arg1: memref<8x128xf32, #tpu.memory_space<vmem>>, %arg2: memref<128x128xf32, #tpu.memory_space<vmem>>, %arg3: memref<1x128xf32, #tpu.memory_space<vmem>>, %arg4: memref<8x128xf32, #tpu.memory_space<vmem>>) attributes {dimension_semantics = [#tpu.dimension_semantics<parallel>], iteration_bounds = array<i64: 1>, scalar_prefetch = 0 : i64, scratch_operands = 0 : i64, tpu.core_type = #tpu.core_type<tc>, window_params = [{transform_indices = @transform_0, window_bounds = array<i64: 8, 128>}, {pipeline_mode = #tpu.pipeline_mode<synchronous>, transform_indices = @transform_1, window_bounds = array<i64: 128, 128>}, {pipeline_mode = #tpu.pipeline_mode<synchronous>, transform_indices = @transform_2, window_bounds = array<i64: 1, 128>}, {transform_indices = @transform_3, window_bounds = array<i64: 8, 128>}]} {
    %c0 = arith.constant 0 : index
    %c0_0 = arith.constant 0 : index
    %0 = vector.load %arg1[%c0, %c0_0] : memref<8x128xf32, #tpu.memory_space<vmem>>, vector<8x128xf32>
    %1 = arith.mulf %0, %0 : vector<8x128xf32>
    %cst = arith.constant dense<0.000000e+00> : vector<8xf32>
    %2 = vector.multi_reduction <add>, %1, %cst [1] : vector<8x128xf32> to vector<8xf32>
    %3 = vector.shape_cast %2 : vector<8xf32> to vector<8x1xf32>
    %cst_1 = arith.constant 3.125000e-02 : f32
    %4 = vector.broadcast %cst_1 : f32 to vector<8x1xf32>
    %5 = arith.mulf %3, %4 : vector<8x1xf32>
    %cst_2 = arith.constant 9.99999993E-9 : f32
    %6 = vector.broadcast %cst_2 : f32 to vector<8x1xf32>
    %7 = arith.addf %5, %6 : vector<8x1xf32>
    %8 = math.rsqrt %7 : vector<8x1xf32>
    %9 = vector.broadcast %8 : vector<8x1xf32> to vector<8x128xf32>
    %10 = arith.mulf %0, %9 : vector<8x128xf32>
    %c0_3 = arith.constant 0 : index
    %c0_4 = arith.constant 0 : index
    %11 = vector.load %arg2[%c0_3, %c0_4] : memref<128x128xf32, #tpu.memory_space<vmem>>, vector<128x128xf32>
    %c0_5 = arith.constant 0 : index
    %c0_6 = arith.constant 0 : index
    %12 = vector.load %arg3[%c0_5, %c0_6] : memref<1x128xf32, #tpu.memory_space<vmem>>, vector<1x128xf32>
    %13 = vector.shape_cast %12 : vector<1x128xf32> to vector<1x128xf32>
    %14 = vector.broadcast %13 : vector<1x128xf32> to vector<8x128xf32>
    %c0_i32 = arith.constant 0 : i32
    %cst_7 = arith.constant 0.000000e+00 : f32
    %15 = vector.broadcast %cst_7 : f32 to vector<8x128xf32>
    %16 = arith.maximumf %10, %15 : vector<8x128xf32>
    %cst_8 = arith.constant dense<0.000000e+00> : vector<8x128xf32>
    %17 = tpu.matmul %16, %11, %cst_8 {dimension_numbers = #tpu.dot_dimension_numbers<[1], [0], [0], [1], [0, 0, 1, 1], [], []>} : vector<8x128xf32>, vector<128x128xf32>, vector<8x128xf32> -> vector<8x128xf32>
    %18 = arith.addf %17, %14 : vector<8x128xf32>
    %c1_i32 = arith.constant 1 : i32
    %cst_9 = arith.constant 0.000000e+00 : f32
    %19 = vector.broadcast %cst_9 : f32 to vector<8x128xf32>
    %20 = arith.maximumf %18, %19 : vector<8x128xf32>
    %cst_10 = arith.constant dense<0.000000e+00> : vector<8x128xf32>
    %21 = tpu.matmul %20, %11, %cst_10 {dimension_numbers = #tpu.dot_dimension_numbers<[1], [0], [0], [1], [0, 0, 1, 1], [], []>} : vector<8x128xf32>, vector<128x128xf32>, vector<8x128xf32> -> vector<8x128xf32>
    %22 = arith.addf %21, %14 : vector<8x128xf32>
    %c2_i32 = arith.constant 2 : i32
    %cst_11 = arith.constant 0.000000e+00 : f32
    %23 = vector.broadcast %cst_11 : f32 to vector<8x128xf32>
    %24 = arith.maximumf %22, %23 : vector<8x128xf32>
    %cst_12 = arith.constant dense<0.000000e+00> : vector<8x128xf32>
    %25 = tpu.matmul %24, %11, %cst_12 {dimension_numbers = #tpu.dot_dimension_numbers<[1], [0], [0], [1], [0, 0, 1, 1], [], []>} : vector<8x128xf32>, vector<128x128xf32>, vector<8x128xf32> -> vector<8x128xf32>
    %26 = arith.addf %25, %14 : vector<8x128xf32>
    %c3_i32 = arith.constant 3 : i32
    %cst_13 = arith.constant 0.000000e+00 : f32
    %27 = vector.broadcast %cst_13 : f32 to vector<8x128xf32>
    %28 = arith.maximumf %26, %27 : vector<8x128xf32>
    %cst_14 = arith.constant dense<0.000000e+00> : vector<8x128xf32>
    %29 = tpu.matmul %28, %11, %cst_14 {dimension_numbers = #tpu.dot_dimension_numbers<[1], [0], [0], [1], [0, 0, 1, 1], [], []>} : vector<8x128xf32>, vector<128x128xf32>, vector<8x128xf32> -> vector<8x128xf32>
    %30 = arith.addf %29, %14 : vector<8x128xf32>
    %c0_15 = arith.constant 0 : index
    %c0_16 = arith.constant 0 : index
    %31 = vector.load %arg4[%c0_15, %c0_16] : memref<8x128xf32, #tpu.memory_space<vmem>>, vector<8x128xf32>
    tpu.vector_store %arg4[%c0_15, %c0_16], %30 {strides = array<i32>} : memref<8x128xf32, #tpu.memory_space<vmem>>, vector<8x128xf32>,
    return
  }
  func.func @transform_0(%arg0: i32) -> (i32, i32) {
    %c0_i32 = arith.constant 0 : i32
    %c0_i32_0 = arith.constant 0 : i32
    return %arg0, %c0_i32 : i32, i32
  }
  func.func @transform_1(%arg0: i32) -> (i32, i32) {
    %c0_i32 = arith.constant 0 : i32
    %c0_i32_0 = arith.constant 0 : i32
    %c0_i32_1 = arith.constant 0 : i32
    return %c0_i32, %c0_i32_0 : i32, i32
  }
  func.func @transform_2(%arg0: i32) -> (i32, i32) {
    %c0_i32 = arith.constant 0 : i32
    %c0_i32_0 = arith.constant 0 : i32
    %c0_i32_1 = arith.constant 0 : i32
    return %c0_i32, %c0_i32_0 : i32, i32
  }
  func.func @transform_3(%arg0: i32) -> (i32, i32) {
    %c0_i32 = arith.constant 0 : i32
    %c0_i32_0 = arith.constant 0 : i32
    return %arg0, %c0_i32 : i32, i32
  }
}

</mosaic_0001>

<bundles_post_ra>
// kernel: tpu_custom_call.1
= control target key start
LH: loop header
LB: loop body
LE: loop exit
PB: predicated region body
PF: predicated region fallthrough
CT: control target
= control target key end

     0   :  { %8 = vsyncpa [#allocation3], 0  ;;  %s313_s0 = inlined_call_operand.hbm [shape: f32[8,128], index: 0, kind: input, shape index: {}]   ;;  %s314_s1 = inlined_call_operand.hbm [shape: f32[128,128], index: 1, kind: input, shape index: {}]   ;;  %s315_s2 = inlined_call_operand.vmem [shape: f32[1,128], index: 2, kind: input, shape index: {}]   ;;  %s316_s3 = inlined_call_operand.hbm [shape: f32[8,128], index: 3, kind: output, shape index: {}]  }
   0x1   :  { %9 = vsyncpa [#allocation6], 0 }
   0x2   :  { %10 = vsyncpa [#allocation4], 0  ;;  %s16_s14 = sshll.u32 %s313_s0, 4  ;;  %s271_s15 = smov [#allocation2]   ;;  %s17_s14 = int_to_ptr.hbm [resolvable:$true] %s16_s14 }
   0x3   :  { %s18_s16 = sshll.u32 %s271_s15, 4  ;;  %s26_s19 = sshll.u32 %s314_s1, 4  ;;  %s19_s16 = int_to_ptr.vmem [resolvable:$true] %s18_s16  ;;  %s27_s19 = int_to_ptr.hbm [resolvable:$true] %s26_s19 }
   0x4   :  { %21 = dma.hbm_to_vmem [thread:$0]  %s17_s14, 128, %s19_s16, [#allocation3]  }
   0x5   :  { %s272_s20 = smov [#allocation5]   ;;  %s273_s22 = smov 128  }
   0x6   :  { %s28_s21 = sshll.u32 %s272_s20, 4  ;;  %s274_s23 = smov 8   ;;  %s29_s21 = int_to_ptr.vmem [resolvable:$true] %s28_s21 }
   0x7   :  { %34 = dma.hbm_to_vmem [thread:$0]  %s27_s19, 2048, %s29_s21, [#allocation6], %s273_s22, %s273_s22, %s274_s23  }
   0x8   :  { %265 = dma.done.wait [#allocation3], 128  }
   0x9   :  { %266 = vsyncadd [#allocation3], 4294967168 }
   0xa   :  { %267 = dma.done.wait [#allocation6], 2048  }
   0xb   :  { %268 = vsyncadd [#allocation6], 4294965248  ;;  %v302_v0 = vld [vmem:[#allocation2] sm:$0xff]  ;;  %v76_v2 = vld [vmem:[#allocation5 + $0x70] sm:$0xff]  ;;  %s275_s24 = smov [#allocation7]   ;;  %s174_s28 = sshll.u32 %s316_s3, 4  ;;  %s175_s28 = int_to_ptr.hbm [resolvable:$true] %s174_s28 }
   0xc   :  { %v77_v1 = vld [vmem:[#allocation5 + $0x78] sm:$0xff]  ;;  %v46_v3 = vmul.f32 %v302_v0, %v302_v0  ;;  %v75_v4 = vld [vmem:[#allocation5 + $0x68] sm:$0xff]  ;;  %v74_v5 = vld [vmem:[#allocation5 + $0x60] sm:$0xff]  ;;  %s172_s25 = sshll.u32 %s275_s24, 4  ;;  %s173_s25 = int_to_ptr.vmem [resolvable:$true] %s172_s25 }
   0xd   :  { %83 = vmatpush.msra.mxu0 %v77_v1  ;;  %104 = vmatpush.msra.mxu1 %v77_v1  ;;  %v73_v6 = vld [vmem:[#allocation5 + $0x58] sm:$0xff]  ;;  %v72_v7 = vld [vmem:[#allocation5 + $0x50] sm:$0xff]  ;;  %v71_v8 = vld [vmem:[#allocation5 + $0x48] sm:$0xff] }
   0xe   :  { %125 = vmatpush.msra.mxu2 %v77_v1  ;;  %146 = vmatpush.msra.mxu3 %v77_v1  ;;  %v70_v9 = vld [vmem:[#allocation5 + $0x40] sm:$0xff]  ;;  %v69_v10 = vld [vmem:[#allocation5 + $0x38] sm:$0xff]  ;;  %v68_v11 = vld [vmem:[#allocation5 + $0x30] sm:$0xff] }
   0xf   :  { %47 = vadd.xlane.f32.xlu0 %v46_v3  ;;  %84 = vmatpush.msra.mxu0 %v76_v2  ;;  %v67_v12 = vld [vmem:[#allocation5 + $0x28] sm:$0xff]  ;;  %v66_v13 = vld [vmem:[#allocation5 + $0x20] sm:$0xff]  ;;  %v65_v14 = vld [vmem:[#allocation5 + $0x18] sm:$0xff] }
  0x10   :  { %105 = vmatpush.msra.mxu1 %v76_v2  ;;  %126 = vmatpush.msra.mxu2 %v76_v2  ;;  %v64_v15 = vld [vmem:[#allocation5 + $0x10] sm:$0xff]  ;;  %v63_v16 = vld [vmem:[#allocation5 + $0x8] sm:$0xff]  ;;  %v62_v17 = vld [vmem:[#allocation5] sm:$0xff] }
  0x11   :  { %147 = vmatpush.msra.mxu3 %v76_v2  ;;  %85 = vmatpush.msra.mxu0 %v75_v4  ;;  %v190_v30 = vld [vmem:[%s315_s2] ss:$0 sm:$0xff] }
  0x12   :  { %106 = vmatpush.msra.mxu1 %v75_v4  ;;  %127 = vmatpush.msra.mxu2 %v75_v4 }
  0x13   :  { %148 = vmatpush.msra.mxu3 %v75_v4  ;;  %86 = vmatpush.msra.mxu0 %v74_v5 }
  0x14   :  { %107 = vmatpush.msra.mxu1 %v74_v5  ;;  %128 = vmatpush.msra.mxu2 %v74_v5 }
  0x15   :  { %149 = vmatpush.msra.mxu3 %v74_v5  ;;  %87 = vmatpush.msra.mxu0 %v73_v6 }
  0x16   :  { %108 = vmatpush.msra.mxu1 %v73_v6  ;;  %129 = vmatpush.msra.mxu2 %v73_v6 }
  0x17   :  { %150 = vmatpush.msra.mxu3 %v73_v6  ;;  %88 = vmatpush.msra.mxu0 %v72_v7 }
  0x18   :  { %109 = vmatpush.msra.mxu1 %v72_v7  ;;  %130 = vmatpush.msra.mxu2 %v72_v7 }
  0x19   :  { %151 = vmatpush.msra.mxu3 %v72_v7  ;;  %89 = vmatpush.msra.mxu0 %v71_v8 }
  0x1a   :  { %110 = vmatpush.msra.mxu1 %v71_v8  ;;  %131 = vmatpush.msra.mxu2 %v71_v8 }
  0x1b   :  { %152 = vmatpush.msra.mxu3 %v71_v8  ;;  %90 = vmatpush.msra.mxu0 %v70_v9 }
  0x1c   :  { %111 = vmatpush.msra.mxu1 %v70_v9  ;;  %132 = vmatpush.msra.mxu2 %v70_v9 }
  0x1d   :  { %153 = vmatpush.msra.mxu3 %v70_v9  ;;  %91 = vmatpush.msra.mxu0 %v69_v10 }
  0x1e   :  { %112 = vmatpush.msra.mxu1 %v69_v10  ;;  %133 = vmatpush.msra.mxu2 %v69_v10 }
  0x1f   :  { %154 = vmatpush.msra.mxu3 %v69_v10  ;;  %92 = vmatpush.msra.mxu0 %v68_v11 }
  0x20   :  { %113 = vmatpush.msra.mxu1 %v68_v11  ;;  %134 = vmatpush.msra.mxu2 %v68_v11 }
  0x21   :  { %155 = vmatpush.msra.mxu3 %v68_v11  ;;  %93 = vmatpush.msra.mxu0 %v67_v12 }
  0x22   :  { %114 = vmatpush.msra.mxu1 %v67_v12  ;;  %135 = vmatpush.msra.mxu2 %v67_v12 }
  0x23   :  { %156 = vmatpush.msra.mxu3 %v67_v12  ;;  %94 = vmatpush.msra.mxu0 %v66_v13 }
  0x24   :  { %115 = vmatpush.msra.mxu1 %v66_v13  ;;  %136 = vmatpush.msra.mxu2 %v66_v13 }
  0x25   :  { %157 = vmatpush.msra.mxu3 %v66_v13  ;;  %95 = vmatpush.msra.mxu0 %v65_v14 }
  0x26   :  { %116 = vmatpush.msra.mxu1 %v65_v14  ;;  %137 = vmatpush.msra.mxu2 %v65_v14 }
  0x27   :  { %158 = vmatpush.msra.mxu3 %v65_v14  ;;  %96 = vmatpush.msra.mxu0 %v64_v15 }
  0x28   :  { %117 = vmatpush.msra.mxu1 %v64_v15  ;;  %138 = vmatpush.msra.mxu2 %v64_v15 }
  0x29   :  { %159 = vmatpush.msra.mxu3 %v64_v15  ;;  %97 = vmatpush.msra.mxu0 %v63_v16 }
  0x2a   :  { %118 = vmatpush.msra.mxu1 %v63_v16  ;;  %139 = vmatpush.msra.mxu2 %v63_v16 }
  0x2b   :  { %160 = vmatpush.msra.mxu3 %v63_v16  ;;  %98 = vmatpush.msra.mxu0 %v62_v17 }
  0x2c   :  { %119 = vmatpush.msra.mxu1 %v62_v17  ;;  %140 = vmatpush.msra.mxu2 %v62_v17 }
  0x2d   :  { %161 = vmatpush.msra.mxu3 %v62_v17 }
  0x82   :  { %v48_v18 = vpop.xlane.xlu0 %47 }
  0x83   :  { %v49_v19 = vmul.f32 0.03125, %v48_v18 }
  0x85   :  { %v50_v20 = vadd.f32 1e-08, %v49_v19 }
  0x87   :  { %191 = vrsqrt.f32 %v50_v20  ;;  %vm57_vm1 = vweird.f32 %v50_v20 }
  0x8d   :  { %v192_v21 = vpop.eup %191 }
  0x8e   :  { %v52_v22 = vmul.f32 %v192_v21, %v50_v20  ;;  %vm58_vm0 = vweird.f32 %v192_v21 }
  0x8f   :  { %vm59_vm2 = vmor %vm57_vm1, %vm58_vm0 }
  0x90   :  { %v53_v23 = vmul.f32 %v192_v21, %v52_v22 }
  0x92   :  { %v54_v24 = vmul.f32 0.5, %v53_v23 }
  0x94   :  { %v55_v25 = vsub.f32 1.5, %v54_v24 }
  0x96   :  { %v56_v26 = vmul.f32 %v192_v21, %v55_v25 }
  0x98   :  { %v60_v27 = vsel %vm59_vm2, %v192_v21, %v56_v26 }
  0x99   :  { %v61_v28 = vmul.f32 %v60_v27, %v302_v0 }
  0x9b   :  { %v82_v29 = vmax.f32 %v61_v28, 0.0 }
  0x9d   :  { %99 = vmatmul.f32.vlgmr.msra.gmra.mxu0 %v82_v29 }
 0x11a   :  { %v100_v31 = vpop.f32.mrf.mxu0 }
 0x11b   :  { %v101_v32 = vadd.f32 %v190_v30, %v100_v31 }
 0x11d   :  { %v103_v33 = vmax.f32 %v101_v32, 0.0 }
 0x11f   :  { %120 = vmatmul.f32.vlgmr.msra.gmra.mxu1 %v103_v33 }
 0x19c   :  { %v121_v34 = vpop.f32.mrf.mxu1 }
 0x19d   :  { %v122_v35 = vadd.f32 %v190_v30, %v121_v34 }
 0x19f   :  { %v124_v36 = vmax.f32 %v122_v35, 0.0 }
 0x1a1   :  { %141 = vmatmul.f32.vlgmr.msra.gmra.mxu2 %v124_v36 }
 0x224   :  { %v142_v37 = vpop.f32.mrf.mxu2 }
 0x225   :  { %v143_v38 = vadd.f32 %v190_v30, %v142_v37 }
 0x227   :  { %v145_v39 = vmax.f32 %v143_v38, 0.0 }
 0x229   :  { %162 = vmatmul.f32.vlgmr.msra.gmra.mxu3 %v145_v39 }
 0x2ac   :  { %v163_v40 = vpop.f32.mrf.mxu3 }
 0x2ad   :  { %v164_v41 = vadd.f32 %v190_v30, %v163_v40 }
 0x2af   :  { %166 = vst [vmem:[#allocation7] sm:$0xff] %v164_v41 }
 0x2b0   :  { %177 = dma.vmem_to_hbm [thread:$0]  %s173_s25, 128, %s175_s28, [#allocation4]  }
 0x2b1   :  { %269 = dma.done.wait [#allocation4], 128  }
 0x2b2   :  { %270 = vsyncadd [#allocation4], 4294967168 }
 0x2b3   :  { %182 = vsyncpa [#allocation3], 1 }
 0x2b4   :  { %183 = vsyncpa [#allocation6], 1 }
 0x2b5   :  { %184 = vsyncpa [#allocation4], 1 }

</bundles_post_ra>
